<compile_context>
chip_gen: v7x
topology: tpu7x:2x2x1
jax: 0.10.0
libtpu: 0.0.40
codegen_flags: <defaults>
</compile_context>

<pallas_src>
import functools

import jax
import jax.numpy as jnp
from jax.experimental import pallas as pl
from jax.experimental.pallas import tpu as pltpu


# --------------------------------------------------------------------------
# Kernel 1: init_conv  (Conv1d, kernel_size=7, padding=3), no wrapper pad.
# --------------------------------------------------------------------------
def _init_conv_kernel(x_ref, w_ref, b_ref, o_ref, *, pad):
    # x_ref: (tb, Cin, L)   unpadded input block (whole L)
    # w_ref: (K, Cout, Cin) taps-first so w_ref[k] is a 2-D matmul operand
    # b_ref: (Cout, 1)
    # o_ref: (tb, Cout, L)
    tb, cin, L = x_ref.shape
    k_taps = w_ref.shape[0]
    cout = o_ref.shape[1]

    # lane-position iota, shared across taps / batch elements
    pos = jax.lax.broadcasted_iota(jnp.int32, (cin, L), 1)

    for bi in range(tb):                       # static, tiny (1 or bs)
        x = x_ref[bi].astype(jnp.float32)      # (Cin, L) per-block upcast only
        acc = jnp.zeros((cout, L), jnp.float32)
        for k in range(k_taps):                # static unroll (K = 7)
            off = k - pad                      # tap k reads x[:, l + off]
            if off == 0:
                xk = x
            else:
                # halo handled in-kernel: circular roll (XLU) + boundary mask,
                # no lane-shifted slice copies and no padded HBM copy.
                shifted = pltpu.roll(x, shift=(-off) % L, axis=1)
                valid = (pos + off >= 0) & (pos + off < L)
                xk = jnp.where(valid, shifted, 0.0)
            acc = acc + jnp.dot(w_ref[k], xk,
                                preferred_element_type=jnp.float32)
        o_ref[bi] = (acc + b_ref[...]).astype(o_ref.dtype)


def init_conv_pallas(x, w, b):
    """x: (bs, Cin, L); w: (Cout, Cin, K) [PyTorch layout]; b: (Cout,)."""
    bs, cin, L = x.shape
    cout, _, K = w.shape
    pad = (K - 1) // 2

    wt = jnp.transpose(w, (2, 0, 1))           # (K, Cout, Cin)
    b2 = b.reshape(cout, 1)

    itemsize = jnp.dtype(x.dtype).itemsize
    # Fold the whole batch into one grid step when the working set is small
    # (per-step overhead dominates on single-TC v5e/v6e); otherwise one batch
    # element per "parallel" step (v7x 2-TC split).
    per_b = (cin + cout) * L * itemsize + (cin + cout) * L * 4
    tb = bs if bs * per_b <= (2 << 20) else 1
    grid_b = bs // tb

    block_bytes = tb * per_b + (K * cout * cin + cout) * 4
    vmem_limit = int(min(64 << 20, max(8 << 20, 6 * block_bytes)))

    kernel = functools.partial(_init_conv_kernel, pad=pad)
    return pl.pallas_call(
        kernel,
        out_shape=jax.ShapeDtypeStruct((bs, cout, L), x.dtype),
        grid_spec=pltpu.PrefetchScalarGridSpec(
            num_scalar_prefetch=0,
            grid=(grid_b,),
            in_specs=[
                pl.BlockSpec((tb, cin, L), lambda i: (i, 0, 0)),
                pl.BlockSpec((K, cout, cin), lambda i: (0, 0, 0)),
                pl.BlockSpec((cout, 1), lambda i: (0, 0)),
            ],
            out_specs=pl.BlockSpec((tb, cout, L), lambda i: (i, 0, 0)),
        ),
        compiler_params=pltpu.CompilerParams(
            dimension_semantics=("parallel",),
            vmem_limit_bytes=vmem_limit,
        ),
        cost_estimate=pl.CostEstimate(
            flops=int(2 * bs * cout * cin * K * L),
            transcendentals=0,
            bytes_accessed=int(bs * (cin + cout) * L * itemsize),
        ),
    )(x, wt, b2)


def init_conv_ref(x, w, b):
    pad = (w.shape[-1] - 1) // 2
    y = jax.lax.conv_general_dilated(
        x.astype(jnp.float32), w.astype(jnp.float32),
        window_strides=(1,), padding=((pad, pad),),
        dimension_numbers=("NCH", "OIH", "NCH"))
    return (y + b[None, :, None]).astype(x.dtype)


# --------------------------------------------------------------------------
# Kernel 2: MLPRegressor (pool='adaptive') head applied to the mid embedding.
#   out = Flatten( Conv1d(ch->2, k=1)( AdaptiveAvgPool1d(1)( SiLU(emb) ) ) )
# grid = (bs, L_tiles), reduction axis last; f32 partial sums accumulate in
# VMEM scratch; tiny projection runs once at the final L tile under pl.when.
# --------------------------------------------------------------------------
def _adaptive_head_kernel(x_ref, w_ref, b_ref, o_ref, acc_ref, *, inv_l):
    # x_ref  : (1, C, TL)  current L tile of the embedding (lane-dense TL)
    # w_ref  : (out_ch, C) 1x1-conv weight
    # b_ref  : (out_ch, 1) 1x1-conv bias
    # o_ref  : (1, out_ch, 1)
    # acc_ref: (C, 1) f32 running sum of SiLU(x) over L
    li = pl.program_id(1)

    @pl.when(li == 0)
    def _():
        acc_ref[...] = jnp.zeros_like(acc_ref)

    x = x_ref[0].astype(jnp.float32)                 # only this tile is upcast
    # SiLU via a single EUP push: x*sigmoid(x) == x*(0.5*tanh(x/2) + 0.5)
    silu = x * (0.5 * jnp.tanh(0.5 * x) + 0.5)
    # Lane reduction on the (otherwise idle) MXU instead of a per-tile XLU
    # cross-lane sum; accumulation stays f32.
    ones = jnp.ones((x.shape[-1], 1), jnp.float32)
    acc_ref[...] += jnp.dot(silu, ones, preferred_element_type=jnp.float32)

    @pl.when(li == pl.num_programs(1) - 1)
    def _():
        mean = acc_ref[...] * inv_l                  # divide once by true L
        # tiny projection (out_ch x C) @ (C x 1); filler hidden under the DMAs
        y = jnp.dot(w_ref[...], mean, preferred_element_type=jnp.float32)
        o_ref[0] = (y + b_ref[...]).astype(o_ref.dtype)


def mlp_regressor_adaptive_pallas(x, w, b, *, lane_tile=2048):
    """x: (bs, C, L); w: (out_ch, C, 1) [PyTorch conv1x1 layout]; b: (out_ch,).

    Accepts bf16 or f32 `x` (per-tile upcast, f32 accumulator). Returns (bs, out_ch).
    """
    bs, c, L = x.shape
    out_ch = w.shape[0]

    w2 = w.reshape(out_ch, c)
    b2 = b.reshape(out_ch, 1)

    tl_cap = max(128, (lane_tile // 128) * 128)      # lane-dense tile cap
    if L <= tl_cap:
        # Whole-L block per batch element: grid is (bs, 1), no padding needed.
        tl, n_lt, Lp = L, 1, L
    else:
        tl = tl_cap
        n_lt = pl.cdiv(L, tl)
        Lp = n_lt * tl
        if Lp != L:
            # SiLU(0) == 0 and we divide by the true L, so zero-padding is exact.
            x = jnp.pad(x, ((0, 0), (0, 0), (0, Lp - L)))

    itemsize = jnp.dtype(x.dtype).itemsize
    # double-buffered input tile + f32 upcast/silu temporaries + headroom
    tile_bytes = 2 * c * tl * itemsize + 2 * c * tl * 4
    vmem_limit = int(min(64 << 20, max(8 << 20, 2 * tile_bytes)))

    kernel = functools.partial(_adaptive_head_kernel, inv_l=1.0 / float(L))
    out3 = pl.pallas_call(
        kernel,
        out_shape=jax.ShapeDtypeStruct((bs, out_ch, 1), x.dtype),
        grid_spec=pltpu.PrefetchScalarGridSpec(
            num_scalar_prefetch=0,
            grid=(bs, n_lt),                              # L (reduction) axis last
            in_specs=[
                pl.BlockSpec((1, c, tl), lambda bi, li: (bi, 0, li)),
                pl.BlockSpec((out_ch, c), lambda bi, li: (0, 0)),
                pl.BlockSpec((out_ch, 1), lambda bi, li: (0, 0)),
            ],
            out_specs=pl.BlockSpec((1, out_ch, 1), lambda bi, li: (bi, 0, 0)),
            scratch_shapes=[pltpu.VMEM((c, 1), jnp.float32)],
        ),
        compiler_params=pltpu.CompilerParams(
            dimension_semantics=("parallel", "arbitrary"),  # batch parallel (v7x)
            vmem_limit_bytes=vmem_limit,
        ),
        cost_estimate=pl.CostEstimate(
            flops=int(5 * bs * c * L + 2 * bs * out_ch * c),
            transcendentals=int(bs * c * L),
            bytes_accessed=int(bs * c * Lp * itemsize + bs * out_ch * itemsize),
        ),
    )(x, w2, b2)
    return out3.reshape(bs, out_ch)                       # Flatten


def mlp_regressor_adaptive_ref(x, w, b):
    s = jax.nn.silu(x.astype(jnp.float32))
    m = jnp.mean(s, axis=-1)                              # (bs, C)
    y = m @ w.reshape(w.shape[0], -1).T + b[None, :]      # 1x1 conv + flatten
    return y.astype(x.dtype)


# --------------------------------------------------------------------------
if __name__ == "__main__":
    key = jax.random.PRNGKey(0)
    k1, k2, k3, k4, k5, k6 = jax.random.split(key, 6)

    # Small Unet1DEncoder config: dim=16, dim_mults=(1,2,4,8), channels=3
    dim, channels = 16, 3
    dim_mults = (1, 2, 4, 8)
    init_dim = dim
    mid_dim = dim * dim_mults[-1]          # dims[-1] = 128
    out_channels = 2

    # ---- init_conv: Conv1d(channels, init_dim, 7, padding=3) ----
    bs, L0 = 2, 256
    x = jax.random.normal(k1, (bs, channels, L0), dtype=jnp.float32)
    w_ic = jax.random.normal(k2, (init_dim, channels, 7), dtype=jnp.float32) * 0.1
    b_ic = jax.random.normal(k3, (init_dim,), dtype=jnp.float32) * 0.1

    h = jax.block_until_ready(init_conv_pallas(x, w_ic, b_ic))
    h_ref = init_conv_ref(x, w_ic, b_ic)
    assert h.shape == (bs, init_dim, L0)
    assert jnp.allclose(h, h_ref, atol=1e-4, rtol=1e-4)

    # ---- out_mlp head (MLPRegressor, pool='adaptive') on the mid embedding ----
    # TODO(synk): downs / mid attention blocks are not defined in the spec, so the
    # mid embedding `emb` (what mid_block2 would return) is synthesized here.
    L_mid = 1024
    emb = jax.random.normal(k4, (bs, mid_dim, L_mid), dtype=jnp.float32)
    # zero_module() makes these zero at init; use random values so the check is non-trivial.
    w_head = jax.random.normal(k5, (out_channels, mid_dim, 1), dtype=jnp.float32) * 0.1
    b_head = jax.random.normal(k6, (out_channels,), dtype=jnp.float32) * 0.1

    out = jax.block_until_ready(mlp_regressor_adaptive_pallas(emb, w_head, b_head))
    out_ref = mlp_regressor_adaptive_ref(emb, w_head, b_head)
    assert out.shape == (bs, out_channels)
    assert jnp.allclose(out, out_ref, atol=1e-4, rtol=1e-4)

    print("KERNEL_OK")
</pallas_src>

<mosaic_0001>
module attributes {stable_mosaic.version = 11 : i64} {
  func.func @_init_conv_kernel(%arg0: i32, %arg1: memref<2x3x256xf32, #tpu.memory_space<vmem>>, %arg2: memref<7x16x3xf32, #tpu.memory_space<vmem>>, %arg3: memref<16x1xf32, #tpu.memory_space<vmem>>, %arg4: memref<2x16x256xf32, #tpu.memory_space<vmem>>) attributes {dimension_semantics = [#tpu.dimension_semantics<parallel>], iteration_bounds = array<i64: 1>, scalar_prefetch = 0 : i64, scratch_operands = 0 : i64, tpu.core_type = #tpu.core_type<tc>, window_params = [{transform_indices = @transform_0, window_bounds = array<i64: 2, 3, 256>}, {pipeline_mode = #tpu.pipeline_mode<synchronous>, transform_indices = @transform_1, window_bounds = array<i64: 7, 16, 3>}, {pipeline_mode = #tpu.pipeline_mode<synchronous>, transform_indices = @transform_2, window_bounds = array<i64: 16, 1>}, {transform_indices = @transform_3, window_bounds = array<i64: 2, 16, 256>}]} {
    %0 = tpu.iota {dimensions = array<i32: 1>} : vector<3x256xi32>
    %c0 = arith.constant 0 : index
    %c0_0 = arith.constant 0 : index
    %c0_1 = arith.constant 0 : index
    %1 = vector.load %arg1[%c0, %c0_0, %c0_1] : memref<2x3x256xf32, #tpu.memory_space<vmem>>, vector<1x3x256xf32>
    %2 = vector.shape_cast %1 : vector<1x3x256xf32> to vector<3x256xf32>
    %cst = arith.constant 0.000000e+00 : f32
    %3 = vector.broadcast %cst : f32 to vector<16x256xf32>
    %c3_i32 = arith.constant 3 : i32
    %4 = tpu.dynamic_rotate %2 by %c3_i32 dim 1 : vector<3x256xf32>, i32 -> vector<3x256xf32>
    %c-3_i32 = arith.constant -3 : i32
    %5 = vector.broadcast %c-3_i32 : i32 to vector<3x256xi32>
    %6 = arith.addi %0, %5 : vector<3x256xi32>
    %c0_i32 = arith.constant 0 : i32
    %7 = vector.broadcast %c0_i32 : i32 to vector<3x256xi32>
    %8 = arith.cmpi sge, %6, %7 : vector<3x256xi32>
    %c-3_i32_2 = arith.constant -3 : i32
    %9 = vector.broadcast %c-3_i32_2 : i32 to vector<3x256xi32>
    %10 = arith.addi %0, %9 : vector<3x256xi32>
    %c256_i32 = arith.constant 256 : i32
    %11 = vector.broadcast %c256_i32 : i32 to vector<3x256xi32>
    %12 = arith.cmpi slt, %10, %11 : vector<3x256xi32>
    %13 = arith.andi %8, %12 : vector<3x256xi1>
    %cst_3 = arith.constant 0.000000e+00 : f32
    %14 = vector.broadcast %cst_3 : f32 to vector<3x256xf32>
    %15 = arith.select %13, %4, %14 : vector<3x256xi1>, vector<3x256xf32>
    %c0_4 = arith.constant 0 : index
    %c0_5 = arith.constant 0 : index
    %c0_6 = arith.constant 0 : index
    %16 = vector.load %arg2[%c0_4, %c0_5, %c0_6] : memref<7x16x3xf32, #tpu.memory_space<vmem>>, vector<1x16x3xf32>
    %17 = vector.shape_cast %16 : vector<1x16x3xf32> to vector<16x3xf32>
    %cst_7 = arith.constant dense<0.000000e+00> : vector<16x256xf32>
    %18 = tpu.matmul %17, %15, %cst_7 {dimension_numbers = #tpu.dot_dimension_numbers<[1], [0], [0], [1], [0, 0, 1, 1], [], []>} : vector<16x3xf32>, vector<3x256xf32>, vector<16x256xf32> -> vector<16x256xf32>
    %19 = arith.addf %3, %18 : vector<16x256xf32>
    %c2_i32 = arith.constant 2 : i32
    %20 = tpu.dynamic_rotate %2 by %c2_i32 dim 1 : vector<3x256xf32>, i32 -> vector<3x256xf32>
    %c-2_i32 = arith.constant -2 : i32
    %21 = vector.broadcast %c-2_i32 : i32 to vector<3x256xi32>
    %22 = arith.addi %0, %21 : vector<3x256xi32>
    %c0_i32_8 = arith.constant 0 : i32
    %23 = vector.broadcast %c0_i32_8 : i32 to vector<3x256xi32>
    %24 = arith.cmpi sge, %22, %23 : vector<3x256xi32>
    %c-2_i32_9 = arith.constant -2 : i32
    %25 = vector.broadcast %c-2_i32_9 : i32 to vector<3x256xi32>
    %26 = arith.addi %0, %25 : vector<3x256xi32>
    %c256_i32_10 = arith.constant 256 : i32
    %27 = vector.broadcast %c256_i32_10 : i32 to vector<3x256xi32>
    %28 = arith.cmpi slt, %26, %27 : vector<3x256xi32>
    %29 = arith.andi %24, %28 : vector<3x256xi1>
    %cst_11 = arith.constant 0.000000e+00 : f32
    %30 = vector.broadcast %cst_11 : f32 to vector<3x256xf32>
    %31 = arith.select %29, %20, %30 : vector<3x256xi1>, vector<3x256xf32>
    %c1 = arith.constant 1 : index
    %c0_12 = arith.constant 0 : index
    %c0_13 = arith.constant 0 : index
    %32 = vector.load %arg2[%c1, %c0_12, %c0_13] : memref<7x16x3xf32, #tpu.memory_space<vmem>>, vector<1x16x3xf32>
    %33 = vector.shape_cast %32 : vector<1x16x3xf32> to vector<16x3xf32>
    %cst_14 = arith.constant dense<0.000000e+00> : vector<16x256xf32>
    %34 = tpu.matmul %33, %31, %cst_14 {dimension_numbers = #tpu.dot_dimension_numbers<[1], [0], [0], [1], [0, 0, 1, 1], [], []>} : vector<16x3xf32>, vector<3x256xf32>, vector<16x256xf32> -> vector<16x256xf32>
    %35 = arith.addf %19, %34 : vector<16x256xf32>
    %c1_i32 = arith.constant 1 : i32
    %36 = tpu.dynamic_rotate %2 by %c1_i32 dim 1 : vector<3x256xf32>, i32 -> vector<3x256xf32>
    %c-1_i32 = arith.constant -1 : i32
    %37 = vector.broadcast %c-1_i32 : i32 to vector<3x256xi32>
    %38 = arith.addi %0, %37 : vector<3x256xi32>
    %c0_i32_15 = arith.constant 0 : i32
    %39 = vector.broadcast %c0_i32_15 : i32 to vector<3x256xi32>
    %40 = arith.cmpi sge, %38, %39 : vector<3x256xi32>
    %c-1_i32_16 = arith.constant -1 : i32
    %41 = vector.broadcast %c-1_i32_16 : i32 to vector<3x256xi32>
    %42 = arith.addi %0, %41 : vector<3x256xi32>
    %c256_i32_17 = arith.constant 256 : i32
    %43 = vector.broadcast %c256_i32_17 : i32 to vector<3x256xi32>
    %44 = arith.cmpi slt, %42, %43 : vector<3x256xi32>
    %45 = arith.andi %40, %44 : vector<3x256xi1>
    %cst_18 = arith.constant 0.000000e+00 : f32
    %46 = vector.broadcast %cst_18 : f32 to vector<3x256xf32>
    %47 = arith.select %45, %36, %46 : vector<3x256xi1>, vector<3x256xf32>
    %c2 = arith.constant 2 : index
    %c0_19 = arith.constant 0 : index
    %c0_20 = arith.constant 0 : index
    %48 = vector.load %arg2[%c2, %c0_19, %c0_20] : memref<7x16x3xf32, #tpu.memory_space<vmem>>, vector<1x16x3xf32>
    %49 = vector.shape_cast %48 : vector<1x16x3xf32> to vector<16x3xf32>
    %cst_21 = arith.constant dense<0.000000e+00> : vector<16x256xf32>
    %50 = tpu.matmul %49, %47, %cst_21 {dimension_numbers = #tpu.dot_dimension_numbers<[1], [0], [0], [1], [0, 0, 1, 1], [], []>} : vector<16x3xf32>, vector<3x256xf32>, vector<16x256xf32> -> vector<16x256xf32>
    %51 = arith.addf %35, %50 : vector<16x256xf32>
    %c3 = arith.constant 3 : index
    %c0_22 = arith.constant 0 : index
    %c0_23 = arith.constant 0 : index
    %52 = vector.load %arg2[%c3, %c0_22, %c0_23] : memref<7x16x3xf32, #tpu.memory_space<vmem>>, vector<1x16x3xf32>
    %53 = vector.shape_cast %52 : vector<1x16x3xf32> to vector<16x3xf32>
    %cst_24 = arith.constant dense<0.000000e+00> : vector<16x256xf32>
    %54 = tpu.matmul %53, %2, %cst_24 {dimension_numbers = #tpu.dot_dimension_numbers<[1], [0], [0], [1], [0, 0, 1, 1], [], []>} : vector<16x3xf32>, vector<3x256xf32>, vector<16x256xf32> -> vector<16x256xf32>
    %55 = arith.addf %51, %54 : vector<16x256xf32>
    %c255_i32 = arith.constant 255 : i32
    %56 = tpu.dynamic_rotate %2 by %c255_i32 dim 1 : vector<3x256xf32>, i32 -> vector<3x256xf32>
    %c1_i32_25 = arith.constant 1 : i32
    %57 = vector.broadcast %c1_i32_25 : i32 to vector<3x256xi32>
    %58 = arith.addi %0, %57 : vector<3x256xi32>
    %c0_i32_26 = arith.constant 0 : i32
    %59 = vector.broadcast %c0_i32_26 : i32 to vector<3x256xi32>
    %60 = arith.cmpi sge, %58, %59 : vector<3x256xi32>
    %c1_i32_27 = arith.constant 1 : i32
    %61 = vector.broadcast %c1_i32_27 : i32 to vector<3x256xi32>
    %62 = arith.addi %0, %61 : vector<3x256xi32>
    %c256_i32_28 = arith.constant 256 : i32
    %63 = vector.broadcast %c256_i32_28 : i32 to vector<3x256xi32>
    %64 = arith.cmpi slt, %62, %63 : vector<3x256xi32>
    %65 = arith.andi %60, %64 : vector<3x256xi1>
    %cst_29 = arith.constant 0.000000e+00 : f32
    %66 = vector.broadcast %cst_29 : f32 to vector<3x256xf32>
    %67 = arith.select %65, %56, %66 : vector<3x256xi1>, vector<3x256xf32>
    %c4 = arith.constant 4 : index
    %c0_30 = arith.constant 0 : index
    %c0_31 = arith.constant 0 : index
    %68 = vector.load %arg2[%c4, %c0_30, %c0_31] : memref<7x16x3xf32, #tpu.memory_space<vmem>>, vector<1x16x3xf32>
    %69 = vector.shape_cast %68 : vector<1x16x3xf32> to vector<16x3xf32>
    %cst_32 = arith.constant dense<0.000000e+00> : vector<16x256xf32>
    %70 = tpu.matmul %69, %67, %cst_32 {dimension_numbers = #tpu.dot_dimension_numbers<[1], [0], [0], [1], [0, 0, 1, 1], [], []>} : vector<16x3xf32>, vector<3x256xf32>, vector<16x256xf32> -> vector<16x256xf32>
    %71 = arith.addf %55, %70 : vector<16x256xf32>
    %c254_i32 = arith.constant 254 : i32
    %72 = tpu.dynamic_rotate %2 by %c254_i32 dim 1 : vector<3x256xf32>, i32 -> vector<3x256xf32>
    %c2_i32_33 = arith.constant 2 : i32
    %73 = vector.broadcast %c2_i32_33 : i32 to vector<3x256xi32>
    %74 = arith.addi %0, %73 : vector<3x256xi32>
    %c0_i32_34 = arith.constant 0 : i32
    %75 = vector.broadcast %c0_i32_34 : i32 to vector<3x256xi32>
    %76 = arith.cmpi sge, %74, %75 : vector<3x256xi32>
    %c2_i32_35 = arith.constant 2 : i32
    %77 = vector.broadcast %c2_i32_35 : i32 to vector<3x256xi32>
    %78 = arith.addi %0, %77 : vector<3x256xi32>
    %c256_i32_36 = arith.constant 256 : i32
    %79 = vector.broadcast %c256_i32_36 : i32 to vector<3x256xi32>
    %80 = arith.cmpi slt, %78, %79 : vector<3x256xi32>
    %81 = arith.andi %76, %80 : vector<3x256xi1>
    %cst_37 = arith.constant 0.000000e+00 : f32
    %82 = vector.broadcast %cst_37 : f32 to vector<3x256xf32>
    %83 = arith.select %81, %72, %82 : vector<3x256xi1>, vector<3x256xf32>
    %c5 = arith.constant 5 : index
    %c0_38 = arith.constant 0 : index
    %c0_39 = arith.constant 0 : index
    %84 = vector.load %arg2[%c5, %c0_38, %c0_39] : memref<7x16x3xf32, #tpu.memory_space<vmem>>, vector<1x16x3xf32>
    %85 = vector.shape_cast %84 : vector<1x16x3xf32> to vector<16x3xf32>
    %cst_40 = arith.constant dense<0.000000e+00> : vector<16x256xf32>
    %86 = tpu.matmul %85, %83, %cst_40 {dimension_numbers = #tpu.dot_dimension_numbers<[1], [0], [0], [1], [0, 0, 1, 1], [], []>} : vector<16x3xf32>, vector<3x256xf32>, vector<16x256xf32> -> vector<16x256xf32>
    %87 = arith.addf %71, %86 : vector<16x256xf32>
    %c253_i32 = arith.constant 253 : i32
    %88 = tpu.dynamic_rotate %2 by %c253_i32 dim 1 : vector<3x256xf32>, i32 -> vector<3x256xf32>
    %c3_i32_41 = arith.constant 3 : i32
    %89 = vector.broadcast %c3_i32_41 : i32 to vector<3x256xi32>
    %90 = arith.addi %0, %89 : vector<3x256xi32>
    %c0_i32_42 = arith.constant 0 : i32
    %91 = vector.broadcast %c0_i32_42 : i32 to vector<3x256xi32>
    %92 = arith.cmpi sge, %90, %91 : vector<3x256xi32>
    %c3_i32_43 = arith.constant 3 : i32
    %93 = vector.broadcast %c3_i32_43 : i32 to vector<3x256xi32>
    %94 = arith.addi %0, %93 : vector<3x256xi32>
    %c256_i32_44 = arith.constant 256 : i32
    %95 = vector.broadcast %c256_i32_44 : i32 to vector<3x256xi32>
    %96 = arith.cmpi slt, %94, %95 : vector<3x256xi32>
    %97 = arith.andi %92, %96 : vector<3x256xi1>
    %cst_45 = arith.constant 0.000000e+00 : f32
    %98 = vector.broadcast %cst_45 : f32 to vector<3x256xf32>
    %99 = arith.select %97, %88, %98 : vector<3x256xi1>, vector<3x256xf32>
    %c6 = arith.constant 6 : index
    %c0_46 = arith.constant 0 : index
    %c0_47 = arith.constant 0 : index
    %100 = vector.load %arg2[%c6, %c0_46, %c0_47] : memref<7x16x3xf32, #tpu.memory_space<vmem>>, vector<1x16x3xf32>
    %101 = vector.shape_cast %100 : vector<1x16x3xf32> to vector<16x3xf32>
    %cst_48 = arith.constant dense<0.000000e+00> : vector<16x256xf32>
    %102 = tpu.matmul %101, %99, %cst_48 {dimension_numbers = #tpu.dot_dimension_numbers<[1], [0], [0], [1], [0, 0, 1, 1], [], []>} : vector<16x3xf32>, vector<3x256xf32>, vector<16x256xf32> -> vector<16x256xf32>
    %103 = arith.addf %87, %102 : vector<16x256xf32>
    %c0_49 = arith.constant 0 : index
    %c0_50 = arith.constant 0 : index
    %104 = vector.load %arg3[%c0_49, %c0_50] : memref<16x1xf32, #tpu.memory_space<vmem>>, vector<16x1xf32>
    %105 = vector.broadcast %104 : vector<16x1xf32> to vector<16x256xf32>
    %106 = arith.addf %103, %105 : vector<16x256xf32>
    %c0_51 = arith.constant 0 : index
    %c0_52 = arith.constant 0 : index
    %c0_53 = arith.constant 0 : index
    %107 = vector.load %arg4[%c0_51, %c0_52, %c0_53] : memref<2x16x256xf32, #tpu.memory_space<vmem>>, vector<1x16x256xf32>
    %108 = vector.shape_cast %107 : vector<1x16x256xf32> to vector<16x256xf32>
    %109 = vector.shape_cast %106 : vector<16x256xf32> to vector<1x16x256xf32>
    tpu.vector_store %arg4[%c0_51, %c0_52, %c0_53], %109 {strides = array<i32>} : memref<2x16x256xf32, #tpu.memory_space<vmem>>, vector<1x16x256xf32>,
    %c1_54 = arith.constant 1 : index
    %c0_55 = arith.constant 0 : index
    %c0_56 = arith.constant 0 : index
    %110 = vector.load %arg1[%c1_54, %c0_55, %c0_56] : memref<2x3x256xf32, #tpu.memory_space<vmem>>, vector<1x3x256xf32>
    %111 = vector.shape_cast %110 : vector<1x3x256xf32> to vector<3x256xf32>
    %cst_57 = arith.constant 0.000000e+00 : f32
    %112 = vector.broadcast %cst_57 : f32 to vector<16x256xf32>
    %c3_i32_58 = arith.constant 3 : i32
    %113 = tpu.dynamic_rotate %111 by %c3_i32_58 dim 1 : vector<3x256xf32>, i32 -> vector<3x256xf32>
    %c-3_i32_59 = arith.constant -3 : i32
    %114 = vector.broadcast %c-3_i32_59 : i32 to vector<3x256xi32>
    %115 = arith.addi %0, %114 : vector<3x256xi32>
    %c0_i32_60 = arith.constant 0 : i32
    %116 = vector.broadcast %c0_i32_60 : i32 to vector<3x256xi32>
    %117 = arith.cmpi sge, %115, %116 : vector<3x256xi32>
    %c-3_i32_61 = arith.constant -3 : i32
    %118 = vector.broadcast %c-3_i32_61 : i32 to vector<3x256xi32>
    %119 = arith.addi %0, %118 : vector<3x256xi32>
    %c256_i32_62 = arith.constant 256 : i32
    %120 = vector.broadcast %c256_i32_62 : i32 to vector<3x256xi32>
    %121 = arith.cmpi slt, %119, %120 : vector<3x256xi32>
    %122 = arith.andi %117, %121 : vector<3x256xi1>
    %cst_63 = arith.constant 0.000000e+00 : f32
    %123 = vector.broadcast %cst_63 : f32 to vector<3x256xf32>
    %124 = arith.select %122, %113, %123 : vector<3x256xi1>, vector<3x256xf32>
    %c0_64 = arith.constant 0 : index
    %c0_65 = arith.constant 0 : index
    %c0_66 = arith.constant 0 : index
    %125 = vector.load %arg2[%c0_64, %c0_65, %c0_66] : memref<7x16x3xf32, #tpu.memory_space<vmem>>, vector<1x16x3xf32>
    %126 = vector.shape_cast %125 : vector<1x16x3xf32> to vector<16x3xf32>
    %cst_67 = arith.constant dense<0.000000e+00> : vector<16x256xf32>
    %127 = tpu.matmul %126, %124, %cst_67 {dimension_numbers = #tpu.dot_dimension_numbers<[1], [0], [0], [1], [0, 0, 1, 1], [], []>} : vector<16x3xf32>, vector<3x256xf32>, vector<16x256xf32> -> vector<16x256xf32>
    %128 = arith.addf %112, %127 : vector<16x256xf32>
    %c2_i32_68 = arith.constant 2 : i32
    %129 = tpu.dynamic_rotate %111 by %c2_i32_68 dim 1 : vector<3x256xf32>, i32 -> vector<3x256xf32>
    %c-2_i32_69 = arith.constant -2 : i32
    %130 = vector.broadcast %c-2_i32_69 : i32 to vector<3x256xi32>
    %131 = arith.addi %0, %130 : vector<3x256xi32>
    %c0_i32_70 = arith.constant 0 : i32
    %132 = vector.broadcast %c0_i32_70 : i32 to vector<3x256xi32>
    %133 = arith.cmpi sge, %131, %132 : vector<3x256xi32>
    %c-2_i32_71 = arith.constant -2 : i32
    %134 = vector.broadcast %c-2_i32_71 : i32 to vector<3x256xi32>
    %135 = arith.addi %0, %134 : vector<3x256xi32>
    %c256_i32_72 = arith.constant 256 : i32
    %136 = vector.broadcast %c256_i32_72 : i32 to vector<3x256xi32>
    %137 = arith.cmpi slt, %135, %136 : vector<3x256xi32>
    %138 = arith.andi %133, %137 : vector<3x256xi1>
    %cst_73 = arith.constant 0.000000e+00 : f32
    %139 = vector.broadcast %cst_73 : f32 to vector<3x256xf32>
    %140 = arith.select %138, %129, %139 : vector<3x256xi1>, vector<3x256xf32>
    %c1_74 = arith.constant 1 : index
    %c0_75 = arith.constant 0 : index
    %c0_76 = arith.constant 0 : index
    %141 = vector.load %arg2[%c1_74, %c0_75, %c0_76] : memref<7x16x3xf32, #tpu.memory_space<vmem>>, vector<1x16x3xf32>
    %142 = vector.shape_cast %141 : vector<1x16x3xf32> to vector<16x3xf32>
    %cst_77 = arith.constant dense<0.000000e+00> : vector<16x256xf32>
    %143 = tpu.matmul %142, %140, %cst_77 {dimension_numbers = #tpu.dot_dimension_numbers<[1], [0], [0], [1], [0, 0, 1, 1], [], []>} : vector<16x3xf32>, vector<3x256xf32>, vector<16x256xf32> -> vector<16x256xf32>
    %144 = arith.addf %128, %143 : vector<16x256xf32>
    %c1_i32_78 = arith.constant 1 : i32
    %145 = tpu.dynamic_rotate %111 by %c1_i32_78 dim 1 : vector<3x256xf32>, i32 -> vector<3x256xf32>
    %c-1_i32_79 = arith.constant -1 : i32
    %146 = vector.broadcast %c-1_i32_79 : i32 to vector<3x256xi32>
    %147 = arith.addi %0, %146 : vector<3x256xi32>
    %c0_i32_80 = arith.constant 0 : i32
    %148 = vector.broadcast %c0_i32_80 : i32 to vector<3x256xi32>
    %149 = arith.cmpi sge, %147, %148 : vector<3x256xi32>
    %c-1_i32_81 = arith.constant -1 : i32
    %150 = vector.broadcast %c-1_i32_81 : i32 to vector<3x256xi32>
    %151 = arith.addi %0, %150 : vector<3x256xi32>
    %c256_i32_82 = arith.constant 256 : i32
    %152 = vector.broadcast %c256_i32_82 : i32 to vector<3x256xi32>
    %153 = arith.cmpi slt, %151, %152 : vector<3x256xi32>
    %154 = arith.andi %149, %153 : vector<3x256xi1>
    %cst_83 = arith.constant 0.000000e+00 : f32
    %155 = vector.broadcast %cst_83 : f32 to vector<3x256xf32>
    %156 = arith.select %154, %145, %155 : vector<3x256xi1>, vector<3x256xf32>
    %c2_84 = arith.constant 2 : index
    %c0_85 = arith.constant 0 : index
    %c0_86 = arith.constant 0 : index
    %157 = vector.load %arg2[%c2_84, %c0_85, %c0_86] : memref<7x16x3xf32, #tpu.memory_space<vmem>>, vector<1x16x3xf32>
    %158 = vector.shape_cast %157 : vector<1x16x3xf32> to vector<16x3xf32>
    %cst_87 = arith.constant dense<0.000000e+00> : vector<16x256xf32>
    %159 = tpu.matmul %158, %156, %cst_87 {dimension_numbers = #tpu.dot_dimension_numbers<[1], [0], [0], [1], [0, 0, 1, 1], [], []>} : vector<16x3xf32>, vector<3x256xf32>, vector<16x256xf32> -> vector<16x256xf32>
    %160 = arith.addf %144, %159 : vector<16x256xf32>
    %c3_88 = arith.constant 3 : index
    %c0_89 = arith.constant 0 : index
    %c0_90 = arith.constant 0 : index
    %161 = vector.load %arg2[%c3_88, %c0_89, %c0_90] : memref<7x16x3xf32, #tpu.memory_space<vmem>>, vector<1x16x3xf32>
    %162 = vector.shape_cast %161 : vector<1x16x3xf32> to vector<16x3xf32>
    %cst_91 = arith.constant dense<0.000000e+00> : vector<16x256xf32>
    %163 = tpu.matmul %162, %111, %cst_91 {dimension_numbers = #tpu.dot_dimension_numbers<[1], [0], [0], [1], [0, 0, 1, 1], [], []>} : vector<16x3xf32>, vector<3x256xf32>, vector<16x256xf32> -> vector<16x256xf32>
    %164 = arith.addf %160, %163 : vector<16x256xf32>
    %c255_i32_92 = arith.constant 255 : i32
    %165 = tpu.dynamic_rotate %111 by %c255_i32_92 dim 1 : vector<3x256xf32>, i32 -> vector<3x256xf32>
    %c1_i32_93 = arith.constant 1 : i32
    %166 = vector.broadcast %c1_i32_93 : i32 to vector<3x256xi32>
    %167 = arith.addi %0, %166 : vector<3x256xi32>
    %c0_i32_94 = arith.constant 0 : i32
    %168 = vector.broadcast %c0_i32_94 : i32 to vector<3x256xi32>
    %169 = arith.cmpi sge, %167, %168 : vector<3x256xi32>
    %c1_i32_95 = arith.constant 1 : i32
    %170 = vector.broadcast %c1_i32_95 : i32 to vector<3x256xi32>
    %171 = arith.addi %0, %170 : vector<3x256xi32>
    %c256_i32_96 = arith.constant 256 : i32
    %172 = vector.broadcast %c256_i32_96 : i32 to vector<3x256xi32>
    %173 = arith.cmpi slt, %171, %172 : vector<3x256xi32>
    %174 = arith.andi %169, %173 : vector<3x256xi1>
    %cst_97 = arith.constant 0.000000e+00 : f32
    %175 = vector.broadcast %cst_97 : f32 to vector<3x256xf32>
    %176 = arith.select %174, %165, %175 : vector<3x256xi1>, vector<3x256xf32>
    %c4_98 = arith.constant 4 : index
    %c0_99 = arith.constant 0 : index
    %c0_100 = arith.constant 0 : index
    %177 = vector.load %arg2[%c4_98, %c0_99, %c0_100] : memref<7x16x3xf32, #tpu.memory_space<vmem>>, vector<1x16x3xf32>
    %178 = vector.shape_cast %177 : vector<1x16x3xf32> to vector<16x3xf32>
    %cst_101 = arith.constant dense<0.000000e+00> : vector<16x256xf32>
    %179 = tpu.matmul %178, %176, %cst_101 {dimension_numbers = #tpu.dot_dimension_numbers<[1], [0], [0], [1], [0, 0, 1, 1], [], []>} : vector<16x3xf32>, vector<3x256xf32>, vector<16x256xf32> -> vector<16x256xf32>
    %180 = arith.addf %164, %179 : vector<16x256xf32>
    %c254_i32_102 = arith.constant 254 : i32
    %181 = tpu.dynamic_rotate %111 by %c254_i32_102 dim 1 : vector<3x256xf32>, i32 -> vector<3x256xf32>
    %c2_i32_103 = arith.constant 2 : i32
    %182 = vector.broadcast %c2_i32_103 : i32 to vector<3x256xi32>
    %183 = arith.addi %0, %182 : vector<3x256xi32>
    %c0_i32_104 = arith.constant 0 : i32
    %184 = vector.broadcast %c0_i32_104 : i32 to vector<3x256xi32>
    %185 = arith.cmpi sge, %183, %184 : vector<3x256xi32>
    %c2_i32_105 = arith.constant 2 : i32
    %186 = vector.broadcast %c2_i32_105 : i32 to vector<3x256xi32>
    %187 = arith.addi %0, %186 : vector<3x256xi32>
    %c256_i32_106 = arith.constant 256 : i32
    %188 = vector.broadcast %c256_i32_106 : i32 to vector<3x256xi32>
    %189 = arith.cmpi slt, %187, %188 : vector<3x256xi32>
    %190 = arith.andi %185, %189 : vector<3x256xi1>
    %cst_107 = arith.constant 0.000000e+00 : f32
    %191 = vector.broadcast %cst_107 : f32 to vector<3x256xf32>
    %192 = arith.select %190, %181, %191 : vector<3x256xi1>, vector<3x256xf32>
    %c5_108 = arith.constant 5 : index
    %c0_109 = arith.constant 0 : index
    %c0_110 = arith.constant 0 : index
    %193 = vector.load %arg2[%c5_108, %c0_109, %c0_110] : memref<7x16x3xf32, #tpu.memory_space<vmem>>, vector<1x16x3xf32>
    %194 = vector.shape_cast %193 : vector<1x16x3xf32> to vector<16x3xf32>
    %cst_111 = arith.constant dense<0.000000e+00> : vector<16x256xf32>
    %195 = tpu.matmul %194, %192, %cst_111 {dimension_numbers = #tpu.dot_dimension_numbers<[1], [0], [0], [1], [0, 0, 1, 1], [], []>} : vector<16x3xf32>, vector<3x256xf32>, vector<16x256xf32> -> vector<16x256xf32>
    %196 = arith.addf %180, %195 : vector<16x256xf32>
    %c253_i32_112 = arith.constant 253 : i32
    %197 = tpu.dynamic_rotate %111 by %c253_i32_112 dim 1 : vector<3x256xf32>, i32 -> vector<3x256xf32>
    %c3_i32_113 = arith.constant 3 : i32
    %198 = vector.broadcast %c3_i32_113 : i32 to vector<3x256xi32>
    %199 = arith.addi %0, %198 : vector<3x256xi32>
    %c0_i32_114 = arith.constant 0 : i32
    %200 = vector.broadcast %c0_i32_114 : i32 to vector<3x256xi32>
    %201 = arith.cmpi sge, %199, %200 : vector<3x256xi32>
    %c3_i32_115 = arith.constant 3 : i32
    %202 = vector.broadcast %c3_i32_115 : i32 to vector<3x256xi32>
    %203 = arith.addi %0, %202 : vector<3x256xi32>
    %c256_i32_116 = arith.constant 256 : i32
    %204 = vector.broadcast %c256_i32_116 : i32 to vector<3x256xi32>
    %205 = arith.cmpi slt, %203, %204 : vector<3x256xi32>
    %206 = arith.andi %201, %205 : vector<3x256xi1>
    %cst_117 = arith.constant 0.000000e+00 : f32
    %207 = vector.broadcast %cst_117 : f32 to vector<3x256xf32>
    %208 = arith.select %206, %197, %207 : vector<3x256xi1>, vector<3x256xf32>
    %c6_118 = arith.constant 6 : index
    %c0_119 = arith.constant 0 : index
    %c0_120 = arith.constant 0 : index
    %209 = vector.load %arg2[%c6_118, %c0_119, %c0_120] : memref<7x16x3xf32, #tpu.memory_space<vmem>>, vector<1x16x3xf32>
    %210 = vector.shape_cast %209 : vector<1x16x3xf32> to vector<16x3xf32>
    %cst_121 = arith.constant dense<0.000000e+00> : vector<16x256xf32>
    %211 = tpu.matmul %210, %208, %cst_121 {dimension_numbers = #tpu.dot_dimension_numbers<[1], [0], [0], [1], [0, 0, 1, 1], [], []>} : vector<16x3xf32>, vector<3x256xf32>, vector<16x256xf32> -> vector<16x256xf32>
    %212 = arith.addf %196, %211 : vector<16x256xf32>
    %c0_122 = arith.constant 0 : index
    %c0_123 = arith.constant 0 : index
    %213 = vector.load %arg3[%c0_122, %c0_123] : memref<16x1xf32, #tpu.memory_space<vmem>>, vector<16x1xf32>
    %214 = vector.broadcast %213 : vector<16x1xf32> to vector<16x256xf32>
    %215 = arith.addf %212, %214 : vector<16x256xf32>
    %c1_124 = arith.constant 1 : index
    %c0_125 = arith.constant 0 : index
    %c0_126 = arith.constant 0 : index
    %216 = vector.load %arg4[%c1_124, %c0_125, %c0_126] : memref<2x16x256xf32, #tpu.memory_space<vmem>>, vector<1x16x256xf32>
    %217 = vector.shape_cast %216 : vector<1x16x256xf32> to vector<16x256xf32>
    %218 = vector.shape_cast %215 : vector<16x256xf32> to vector<1x16x256xf32>
    tpu.vector_store %arg4[%c1_124, %c0_125, %c0_126], %218 {strides = array<i32>} : memref<2x16x256xf32, #tpu.memory_space<vmem>>, vector<1x16x256xf32>,
    return
  }
  func.func @transform_0(%arg0: i32) -> (i32, i32, i32) {
    %c0_i32 = arith.constant 0 : i32
    %c0_i32_0 = arith.constant 0 : i32
    %c0_i32_1 = arith.constant 0 : i32
    return %arg0, %c0_i32, %c0_i32_0 : i32, i32, i32
  }
  func.func @transform_1(%arg0: i32) -> (i32, i32, i32) {
    %c0_i32 = arith.constant 0 : i32
    %c0_i32_0 = arith.constant 0 : i32
    %c0_i32_1 = arith.constant 0 : i32
    %c0_i32_2 = arith.constant 0 : i32
    return %c0_i32, %c0_i32_0, %c0_i32_1 : i32, i32, i32
  }
  func.func @transform_2(%arg0: i32) -> (i32, i32) {
    %c0_i32 = arith.constant 0 : i32
    %c0_i32_0 = arith.constant 0 : i32
    %c0_i32_1 = arith.constant 0 : i32
    return %c0_i32, %c0_i32_0 : i32, i32
  }
  func.func @transform_3(%arg0: i32) -> (i32, i32, i32) {
    %c0_i32 = arith.constant 0 : i32
    %c0_i32_0 = arith.constant 0 : i32
    %c0_i32_1 = arith.constant 0 : i32
    return %arg0, %c0_i32, %c0_i32_0 : i32, i32, i32
  }
}

</mosaic_0001>

<bundles_post_ra>
// kernel: tpu_custom_call.1
= control target key start
LH: loop header
LB: loop body
LE: loop exit
PB: predicated region body
PF: predicated region fallthrough
CT: control target
= control target key end

     0   :  { %s1720_s16 = smov 2   ;;  %v1721_v4 = vmov 0.0   ;;  %s2008_s0 = inlined_call_operand.vmem [shape: f32[2,3,256], index: 0, kind: input, shape index: {}]   ;;  %s2009_s1 = inlined_call_operand.vmem [shape: f32[7,16,3], index: 1, kind: input, shape index: {}]   ;;  %s2010_s2 = inlined_call_operand.vmem [shape: f32[16,1], index: 2, kind: input, shape index: {}]   ;;  %s2011_s3 = inlined_call_operand.hbm [shape: f32[2,16,256], index: 3, kind: output, shape index: {}]  }
   0x1   :  { %v1754_v0 = vld [vmem:[%s2008_s0 + $0x8] sm:$0x77]  ;;  %v1759_v1 = vld [vmem:[%s2008_s0] sm:$0x77]  ;;  %139 = vmatprep.mubr.f32.mxu0 %v1721_v4  ;;  %908 = vmatprep.mubr.f32.mxu1 %v1721_v4 }
   0x2   :  { %822 = vrot.lane.b32.xlu1 %v1754_v0, %s1720_s16  ;;  %41 = vrot.lane.b32.xlu0 %v1759_v1, %s1720_s16  ;;  %v1765_v2 = vcombine.high %v1754_v0, %v1754_v0  ;;  %v1769_v3 = vcombine.high %v1759_v1, %v1759_v1 }
   0x3   :  { %8 = vsyncpa [#allocation3], 0  ;;  %s1722_s0 = smov 3   ;;  %s1723_s17 = smov 1   ;;  %v788_v5 = vld [vmem:[%s2010_s2 + $0x8] sm:$0xff]  ;;  %v1515_v6 = vld [vmem:[%s2010_s2] sm:$0xff]  ;;  %v15_v8 = vlaneseq }
   0x4   :  { %s1724_s18 = smov 127   ;;  %s1725_s19 = smov 126   ;;  %v1727_v7 = vmov 0   ;;  %vm68_vm1 = vcmask 1042432   ;;  %vm61_vm3 = vcmask 23552   ;;  %v1552_v20 = vld [vmem:[%s2009_s1 + $0x10] sm:$0xff] }
   0x5   :  { %s1726_s20 = smov 125   ;;  %1693 = vset.pattern.permute.xlu1 %v1727_v7  ;;  %1692 = vset.pattern.permute.xlu0 %v1727_v7  ;;  %v1801_v9 = vand.u32 127, %v15_v8  ;;  %v1553_v27 = vld [vmem:[%s2009_s1 + $0x18] sm:$0xff]  ;;  %v39_v34 = vld [vmem:[%s2009_s1] sm:$0xff]  ;;  %v40_v41 = vld [vmem:[%s2009_s1 + $0x8] sm:$0xff]  ;;  %s1728_s24 = smov [#allocation2]  }
   0x6   :  { %824 = vrot.lane.b32.xlu1 %v1765_v2, %s1720_s16  ;;  %43 = vrot.lane.b32.xlu0 %v1769_v3, %s1720_s16  ;;  %v1562_v48 = vld [vmem:[%s2009_s1 + $0x20] sm:$0xff]  ;;  %v1563_v52 = vld [vmem:[%s2009_s1 + $0x28] sm:$0xff]  ;;  %s1541_s2 = sshll.u32 %s1728_s24, 4  ;;  %s1542_s2 = int_to_ptr.vmem [resolvable:$true] %s1541_s2 }
   0x7   :  { %v48_v10 = vadd.s32 4294967294, %v1801_v9  ;;  %vm45_vm0 = vcmp.lt.s32.totalorder %v1801_v9, 2  ;;  %v29_v13 = vadd.s32 4294967293, %v1801_v9  ;;  %vm26_vm4 = vcmp.lt.s32.totalorder %v1801_v9, 3  ;;  %v1568_v58 = vld [vmem:[%s2009_s1 + $0x30] sm:$0xff]  ;;  %v1574_v8 = vld [vmem:[%s2009_s1 + $0x40] sm:$0xff]  ;;  %p1701_p1 = scmp.lt.s32.totalorder %s1542_s2, %s1542_s2 }
   0x8   :  { %v248_v29 = vadd.s32 4294967295, %v1801_v9  ;;  %vm245_vm6 = vcmp.lt.s32.totalorder %v1801_v9, 1  ;;  %v1845_v36 = vadd.s32 128, %v1801_v9  ;;  %vm452_vm8 = vcmp.lt.s32.totalorder %v1801_v9, 127 }
   0x9   :  { %vm50_vm2 = vcmp.ge.s32.totalorder %v48_v10, 0  ;;  %vm31_vm5 = vcmp.ge.s32.totalorder %v29_v13, 0  ;;  %vm565_vm10 = vcmp.lt.s32.totalorder %v1801_v9, 126  ;;  %vm678_vm12 = vcmp.lt.s32.totalorder %v1801_v9, 125  ;;  %v1586_v9 = vld [vmem:[%s2009_s1 + $0x60] sm:$0xff] }
   0xa   :  { %24 = vrot.lane.b32.xlu1 %v1769_v3, %s1722_s0  ;;  %22 = vrot.lane.b32.xlu0 %v1759_v1, %s1722_s0  ;;  %vm250_vm7 = vcmp.ge.s32.totalorder %v248_v29, 0  ;;  %v456_v43 = vadd.s32 1, %v1845_v36  ;;  %v569_v55 = vadd.s32 2, %v1845_v36 }
   0xc   :  { %vm460_vm9 = vcmp.lt.s32.totalorder %v456_v43, 256  ;;  %vm573_vm11 = vcmp.lt.s32.totalorder %v569_v55, 256 }
   0xe   :  { %814 = vrot.lane.b32.xlu1 %v1765_v2, %s1722_s0  ;;  %812 = vrot.lane.b32.xlu0 %v1754_v0, %s1722_s0 }
  0x12   :  { %243 = vrot.lane.b32.xlu1 %v1769_v3, %s1723_s17  ;;  %241 = vrot.lane.b32.xlu0 %v1759_v1, %s1723_s17 }
  0x16   :  { %1012 = vrot.lane.b32.xlu1 %v1765_v2, %s1723_s17  ;;  %1010 = vrot.lane.b32.xlu0 %v1754_v0, %s1723_s17 }
  0x1a   :  { %450 = vrot.lane.b32.xlu1 %v1769_v3, %s1724_s18  ;;  %448 = vrot.lane.b32.xlu0 %v1759_v1, %s1724_s18 }
  0x1e   :  { %1208 = vrot.lane.b32.xlu1 %v1765_v2, %s1724_s18  ;;  %1206 = vrot.lane.b32.xlu0 %v1754_v0, %s1724_s18 }
  0x22   :  { %563 = vrot.lane.b32.xlu1 %v1769_v3, %s1725_s19  ;;  %561 = vrot.lane.b32.xlu0 %v1759_v1, %s1725_s19 }
  0x26   :  { %1311 = vrot.lane.b32.xlu1 %v1765_v2, %s1725_s19  ;;  %1309 = vrot.lane.b32.xlu0 %v1754_v0, %s1725_s19 }
  0x2a   :  { %676 = vrot.lane.b32.xlu1 %v1769_v3, %s1726_s20  ;;  %674 = vrot.lane.b32.xlu0 %v1759_v1, %s1726_s20 }
  0x2e   :  { %1414 = vrot.lane.b32.xlu1 %v1765_v2, %s1726_s20  ;;  %1412 = vrot.lane.b32.xlu0 %v1754_v0, %s1726_s20 }
  0x32   :  { %796 = vperm.xlu1 %1693, %v788_v5   ;;  %791 = vperm.xlu0 %1692, %v1515_v6  }
  0x36   :  { %1519 = vperm.xlu1 %1693, %v1515_v6   ;;  %1524 = vperm.xlu0 %1692, %v788_v5   ;;  %v682_v5 = vadd.s32 3, %v1845_v36 }
  0x38   :  { %vm686_vm13 = vcmp.lt.s32.totalorder %v682_v5, 256 }
  0x74   :  { %v823_v11 = vpop.permute.xlu1 %822  ;;  %v42_v12 = vpop.permute.xlu0 %41 }
  0x78   :  { %v825_v14 = vpop.permute.xlu1 %824  ;;  %v44_v15 = vpop.permute.xlu0 %43 }
  0x79   :  { %v827_v16 = vsel %vm45_vm0, %v825_v14, %v823_v11  ;;  %v47_v17 = vsel %vm45_vm0, %v44_v15, %v42_v12  ;;  %v46_v18 = vsel %vm45_vm0, %v42_v12, %v44_v15  ;;  %v826_v19 = vsel %vm45_vm0, %v823_v11, %v825_v14 }
  0x7a   :  { %1554 = vmatprep.subr.msk.mxu0 %vm68_vm1, %v46_v18  ;;  %1595 = vmatprep.subr.msk.mxu1 %vm68_vm1, %v826_v19  ;;  %v56_v21 = vsel %vm50_vm2, %v47_v17, 0.0  ;;  %v828_v22 = vsel %vm50_vm2, %v827_v16, 0.0  ;;  %v1575_v16 = vld [vmem:[%s2009_s1 + $0x48] sm:$0xff] }
  0x7b   :  { %1555 = vmatpush1.msk.msra.mxu0 %vm68_vm1, %v56_v21  ;;  %1596 = vmatpush1.msk.msra.mxu1 %vm68_vm1, %v828_v22  ;;  %v1580_v21 = vld [vmem:[%s2009_s1 + $0x50] sm:$0xff] }
  0x7c   :  { %v25_v23 = vpop.permute.xlu1 %24  ;;  %v23_v24 = vpop.permute.xlu0 %22  ;;  %1556 = vmatmul.mubr.msk.f32.vlgmr.msra.gmra.mrb[0].mxu0 %vm61_vm3, %v1552_v20  ;;  %1597 = vmatmul.mubr.msk.f32.vlgmr.msra.gmra.mrb[0].mxu1 %vm61_vm3, %v1552_v20 }
  0x7d   :  { %v27_v25 = vsel %vm26_vm4, %v23_v24, %v25_v23  ;;  %v28_v26 = vsel %vm26_vm4, %v25_v23, %v23_v24  ;;  %145 = vmatprep.mubr.f32.mxu0 %v1721_v4  ;;  %914 = vmatprep.mubr.f32.mxu1 %v1721_v4 }
  0x7e   :  { %v37_v28 = vsel %vm31_vm5, %v28_v26, 0.0  ;;  %1558 = vmatprep.subr.msk.mxu0 %vm68_vm1, %v27_v25  ;;  %v1581_v26 = vld [vmem:[%s2009_s1 + $0x58] sm:$0xff] }
  0x7f   :  { %1559 = vmatpush1.msk.msra.mxu0 %vm68_vm1, %v37_v28 }
  0x80   :  { %v815_v30 = vpop.permute.xlu1 %814  ;;  %v813_v31 = vpop.permute.xlu0 %812  ;;  %1557 = vmatmul.mubr.msk.f32.gmra.mrb[2].mxu0 %vm61_vm3, %v1553_v27  ;;  %1598 = vmatmul.mubr.msk.f32.gmra.mrb[2].mxu1 %vm61_vm3, %v1553_v27  ;;  %v1587_v27 = vld [vmem:[%s2009_s1 + $0x68] sm:$0xff] }
  0x81   :  { %v816_v32 = vsel %vm26_vm4, %v813_v31, %v815_v30  ;;  %v817_v33 = vsel %vm26_vm4, %v815_v30, %v813_v31  ;;  %228 = vmatprep.mubr.f32.mxu0 %v1721_v4  ;;  %997 = vmatprep.mubr.f32.mxu1 %v1721_v4 }
  0x82   :  { %v818_v35 = vsel %vm31_vm5, %v817_v33, 0.0  ;;  %1599 = vmatprep.subr.msk.mxu1 %vm68_vm1, %v816_v32 }
  0x83   :  { %1600 = vmatpush1.msk.msra.mxu1 %vm68_vm1, %v818_v35 }
  0x84   :  { %v244_v37 = vpop.permute.xlu1 %243  ;;  %v242_v38 = vpop.permute.xlu0 %241  ;;  %1560 = vmatmul.mubr.msk.f32.vlgmr.msra.gmra.mrb[0].mxu0 %vm61_vm3, %v39_v34  ;;  %1601 = vmatmul.mubr.msk.f32.vlgmr.msra.gmra.mrb[0].mxu1 %vm61_vm3, %v39_v34 }
  0x85   :  { %v246_v39 = vsel %vm245_vm6, %v242_v38, %v244_v37  ;;  %v247_v40 = vsel %vm245_vm6, %v244_v37, %v242_v38  ;;  %234 = vmatprep.mubr.f32.mxu0 %v1721_v4  ;;  %1003 = vmatprep.mubr.f32.mxu1 %v1721_v4 }
  0x86   :  { %v256_v42 = vsel %vm250_vm7, %v247_v40, 0.0  ;;  %1564 = vmatprep.subr.msk.mxu0 %vm68_vm1, %v246_v39 }
  0x87   :  { %1565 = vmatpush1.msk.msra.mxu0 %vm68_vm1, %v256_v42 }
  0x88   :  { %v1013_v44 = vpop.permute.xlu1 %1012  ;;  %v1011_v45 = vpop.permute.xlu0 %1010  ;;  %1561 = vmatmul.mubr.msk.f32.gmra.mrb[2].mxu0 %vm61_vm3, %v40_v41  ;;  %1602 = vmatmul.mubr.msk.f32.gmra.mrb[2].mxu1 %vm61_vm3, %v40_v41 }
  0x89   :  { %v1014_v46 = vsel %vm245_vm6, %v1011_v45, %v1013_v44  ;;  %v1015_v47 = vsel %vm245_vm6, %v1013_v44, %v1011_v45  ;;  %337 = vmatprep.mubr.f32.mxu0 %v1721_v4  ;;  %1096 = vmatprep.mubr.f32.mxu1 %v1721_v4 }
  0x8a   :  { %v1016_v49 = vsel %vm250_vm7, %v1015_v47, 0.0  ;;  %1605 = vmatprep.subr.msk.mxu1 %vm68_vm1, %v1014_v46  ;;  %1570 = vmatprep.subr.msk.mxu0 %vm68_vm1, %v1769_v3 }
  0x8b   :  { %1606 = vmatpush1.msk.msra.mxu1 %vm68_vm1, %v1016_v49 }
  0x8c   :  { %1566 = vmatmul.mubr.msk.f32.vlgmr.msra.gmra.mrb[0].mxu0 %vm61_vm3, %v1562_v48  ;;  %1607 = vmatmul.mubr.msk.f32.vlgmr.msra.gmra.mrb[0].mxu1 %vm61_vm3, %v1562_v48  ;;  %v451_v50 = vpop.permute.xlu1 %450  ;;  %v449_v51 = vpop.permute.xlu0 %448 }
  0x8d   :  { %343 = vmatprep.mubr.f32.mxu0 %v1721_v4  ;;  %1102 = vmatprep.mubr.f32.mxu1 %v1721_v4  ;;  %v454_v53 = vsel %vm452_vm8, %v451_v50, %v449_v51  ;;  %v453_v60 = vsel %vm452_vm8, %v449_v51, %v451_v50 }
  0x8e   :  { %v464_v54 = vsel %vm460_vm9, %v454_v53, 0.0  ;;  %1611 = vmatprep.subr.msk.mxu1 %vm68_vm1, %v1765_v2  ;;  %1571 = vmatpush1.msk.msra.mxu0 %vm68_vm1, %v1759_v1  ;;  %v1569_v1 = vld [vmem:[%s2009_s1 + $0x38] sm:$0xff]  ;;  %s1696_s1 = scalar_lea.vmem %s1542_s2, 1024 }
  0x8f   :  { %1612 = vmatpush1.msk.msra.mxu1 %vm68_vm1, %v1754_v0  ;;  %1576 = vmatprep.subr.msk.mxu0 %vm68_vm1, %v464_v54  ;;  %p1697_p0 = scmp.ne.s32.totalorder %s1542_s2, %s1696_s1  ;;  %p1702_p2 = scmp.lt.s32.totalorder %s1696_s1, %s1696_s1 }
  0x90   :  { %1567 = vmatmul.mubr.msk.f32.gmra.mrb[2].mxu0 %vm61_vm3, %v1563_v52  ;;  %1608 = vmatmul.mubr.msk.f32.gmra.mrb[2].mxu1 %vm61_vm3, %v1563_v52  ;;  %v1209_v56 = vpop.permute.xlu1 %1208  ;;  %v1207_v57 = vpop.permute.xlu0 %1206 }
  0x91   :  { %431 = vmatprep.mubr.f32.mxu0 %v1721_v4  ;;  %1189 = vmatprep.mubr.f32.mxu1 %v1721_v4  ;;  %v1211_v59 = vsel %vm452_vm8, %v1209_v56, %v1207_v57  ;;  %v1210_v62 = vsel %vm452_vm8, %v1207_v57, %v1209_v56  ;;  %p1703_p3 = por %p1702_p2, %p1701_p1 }
  0x92   :  { %v1213_v61 = vsel %vm460_vm9, %v1211_v59, 0.0 }
  0x93   :  { %1617 = vmatprep.subr.msk.mxu1 %vm68_vm1, %v1213_v61  ;;  %p1704_p4 = pnand %p1703_p3, %p1697_p0 }
  0x94   :  { %1572 = vmatmul.mubr.msk.f32.vlgmr.msra.gmra.mrb[0].mxu0 %vm61_vm3, %v1568_v58  ;;  %1613 = vmatmul.mubr.msk.f32.vlgmr.msra.gmra.mrb[0].mxu1 %vm61_vm3, %v1568_v58  ;;  %v564_v63 = vpop.permute.xlu1 %563  ;;  %v562_v0 = vpop.permute.xlu0 %561 }
  0x95   :  { %1577 = vmatpush1.msk.msra.mxu0 %vm68_vm1, %v453_v60  ;;  %437 = vmatprep.mubr.f32.mxu0 %v1721_v4  ;;  %v567_v2 = vsel %vm565_vm10, %v564_v63, %v562_v0  ;;  %v566_v11 = vsel %vm565_vm10, %v562_v0, %v564_v63 }
  0x96   :  { %1195 = vmatprep.mubr.f32.mxu1 %v1721_v4  ;;  %v577_v3 = vsel %vm573_vm11, %v567_v2, 0.0  ;;  %1618 = vmatpush1.msk.msra.mxu1 %vm68_vm1, %v1210_v62 }
  0x97   :  { %1582 = vmatprep.subr.msk.mxu0 %vm68_vm1, %v577_v3 }
  0x98   :  { %1573 = vmatmul.mubr.msk.f32.gmra.mrb[2].mxu0 %vm61_vm3, %v1569_v1  ;;  %1614 = vmatmul.mubr.msk.f32.gmra.mrb[2].mxu1 %vm61_vm3, %v1569_v1  ;;  %v1312_v6 = vpop.permute.xlu1 %1311  ;;  %v1310_v7 = vpop.permute.xlu0 %1309 }
  0x99   :  { %544 = vmatprep.mubr.f32.mxu0 %v1721_v4  ;;  %1292 = vmatprep.mubr.f32.mxu1 %v1721_v4  ;;  %v1314_v10 = vsel %vm565_vm10, %v1312_v6, %v1310_v7  ;;  %v1313_v13 = vsel %vm565_vm10, %v1310_v7, %v1312_v6 }
  0x9a   :  { %v1316_v12 = vsel %vm573_vm11, %v1314_v10, 0.0 }
  0x9b   :  { %1623 = vmatprep.subr.msk.mxu1 %vm68_vm1, %v1316_v12 }
  0x9c   :  { %1578 = vmatmul.mubr.msk.f32.vlgmr.msra.gmra.mrb[0].mxu0 %vm61_vm3, %v1574_v8  ;;  %1619 = vmatmul.mubr.msk.f32.vlgmr.msra.gmra.mrb[0].mxu1 %vm61_vm3, %v1574_v8  ;;  %v677_v14 = vpop.permute.xlu1 %676  ;;  %v675_v15 = vpop.permute.xlu0 %674 }
  0x9d   :  { %1583 = vmatpush1.msk.msra.mxu0 %vm68_vm1, %v566_v11  ;;  %550 = vmatprep.mubr.f32.mxu0 %v1721_v4  ;;  %v680_v17 = vsel %vm678_vm12, %v677_v14, %v675_v15  ;;  %v679_v23 = vsel %vm678_vm12, %v675_v15, %v677_v14 }
  0x9e   :  { %1298 = vmatprep.mubr.f32.mxu1 %v1721_v4  ;;  %v690_v18 = vsel %vm686_vm13, %v680_v17, 0.0  ;;  %1624 = vmatpush1.msk.msra.mxu1 %vm68_vm1, %v1313_v13 }
  0x9f   :  { %1588 = vmatprep.subr.msk.mxu0 %vm68_vm1, %v690_v18 }
  0xa0   :  { %1579 = vmatmul.mubr.msk.f32.gmra.mrb[2].mxu0 %vm61_vm3, %v1575_v16  ;;  %1620 = vmatmul.mubr.msk.f32.gmra.mrb[2].mxu1 %vm61_vm3, %v1575_v16  ;;  %v1415_v19 = vpop.permute.xlu1 %1414  ;;  %v1413_v20 = vpop.permute.xlu0 %1412 }
  0xa1   :  { %657 = vmatprep.mubr.f32.mxu0 %v1721_v4  ;;  %1395 = vmatprep.mubr.f32.mxu1 %v1721_v4  ;;  %v1417_v22 = vsel %vm678_vm12, %v1415_v19, %v1413_v20  ;;  %v1416_v25 = vsel %vm678_vm12, %v1413_v20, %v1415_v19 }
  0xa2   :  { %v1419_v24 = vsel %vm686_vm13, %v1417_v22, 0.0 }
  0xa3   :  { %1629 = vmatprep.subr.msk.mxu1 %vm68_vm1, %v1419_v24 }
  0xa4   :  { %1584 = vmatmul.mubr.msk.f32.vlgmr.msra.gmra.mrb[0].mxu0 %vm61_vm3, %v1580_v21  ;;  %1625 = vmatmul.mubr.msk.f32.vlgmr.msra.gmra.mrb[0].mxu1 %vm61_vm3, %v1580_v21 }
  0xa5   :  { %1589 = vmatpush1.msk.msra.mxu0 %vm68_vm1, %v679_v23  ;;  %663 = vmatprep.mubr.f32.mxu0 %v1721_v4 }
  0xa6   :  { %1401 = vmatprep.mubr.f32.mxu1 %v1721_v4  ;;  %1630 = vmatpush1.msk.msra.mxu1 %vm68_vm1, %v1416_v25 }
  0xa8   :  { %1585 = vmatmul.mubr.msk.f32.gmra.mrb[2].mxu0 %vm61_vm3, %v1581_v26  ;;  %1626 = vmatmul.mubr.msk.f32.gmra.mrb[2].mxu1 %vm61_vm3, %v1581_v26 }
  0xa9   :  { %770 = vmatprep.mubr.f32.mxu0 %v1721_v4  ;;  %1498 = vmatprep.mubr.f32.mxu1 %v1721_v4 }
  0xac   :  { %1590 = vmatmul.mubr.msk.f32.vlgmr.msra.gmra.mrb[0].mxu0 %vm61_vm3, %v1586_v9  ;;  %1631 = vmatmul.mubr.msk.f32.vlgmr.msra.gmra.mrb[0].mxu1 %vm61_vm3, %v1586_v9 }
  0xad   :  { %776 = vmatprep.mubr.f32.mxu0 %v1721_v4  ;;  %1504 = vmatprep.mubr.f32.mxu1 %v1721_v4 }
  0xb0   :  { %1591 = vmatmul.mubr.msk.f32.gmra.mrb[2].mxu0 %vm61_vm3, %v1587_v27  ;;  %1632 = vmatmul.mubr.msk.f32.gmra.mrb[2].mxu1 %vm61_vm3, %v1587_v27 }
  0xb1   :  { %v797_v28 = vpop.permute.xlu1 %796  ;;  %v792_v29 = vpop.permute.xlu0 %791 }
  0xb5   :  { %v1520_v30 = vpop.permute.xlu1 %1519  ;;  %v1525_v4 = vpop.permute.xlu0 %1524 }
 0x17f   :  { %v772_v31 = vpop.f32.mrb[0].mxu0  ;;  %v1500_v32 = vpop.f32.mrb[0].mxu1 }
 0x180   :  { %v799_v33 = vadd.f32 %v792_v29, %v772_v31  ;;  %v1527_v34 = vadd.f32 %v1520_v30, %v1500_v32  ;;  %v774_v35 = vpop.f32.mrb[1].mxu0  ;;  %v1502_v36 = vpop.f32.mrb[1].mxu1 }
 0x181   :  { %v800_v37 = vadd.f32 %v792_v29, %v774_v35  ;;  %v1528_v38 = vadd.f32 %v1520_v30, %v1502_v36 }
 0x182   :  { %803 = vst [vmem:[#allocation2] sm:$0xff] %v799_v33  ;;  %1532 = vst [vmem:[#allocation2 + $0x20] sm:$0xff] %v1527_v34 }
 0x183   :  { %804 = vst [vmem:[#allocation2 + $0x8] sm:$0xff] %v800_v37  ;;  %1533 = vst [vmem:[#allocation2 + $0x28] sm:$0xff] %v1528_v38  ;;  %v778_v39 = vpop.f32.mrb[2].mxu0  ;;  %v1506_v40 = vpop.f32.mrb[2].mxu1 }
 0x184   :  { %v801_v41 = vadd.f32 %v797_v28, %v778_v39  ;;  %v1529_v42 = vadd.f32 %v1525_v4, %v1506_v40  ;;  %v780_v43 = vpop.f32.mrb[3].mxu0  ;;  %v1508_v44 = vpop.f32.mrb[3].mxu1 }
 0x185   :  { %v802_v45 = vadd.f32 %v797_v28, %v780_v43  ;;  %v1530_v46 = vadd.f32 %v1525_v4, %v1508_v44 }
 0x186   :  { %805 = vst [vmem:[#allocation2 + $0x10] sm:$0xff] %v801_v41  ;;  %1534 = vst [vmem:[#allocation2 + $0x30] sm:$0xff] %v1529_v42 }
 0x187   :  { %806 = vst [vmem:[#allocation2 + $0x18] sm:$0xff] %v802_v45  ;;  %1535 = vst [vmem:[#allocation2 + $0x38] sm:$0xff] %v1530_v46 }
 0x188   :  { %1707 = shalt.err (!%p1704_p4)
}
 0x189   :  { %s1708_s27 = scalar_lea.hbm %s2011_s3, 1024 }
 0x18a   :  { %p1709_p5 = scmp.ne.s32.totalorder %s2011_s3, %s1708_s27  ;;  %p1712_p6 = scmp.lt.u32.totalorder %s1708_s27, %s2011_s3 }
 0x18c   :  { %p1714_p7 = pnand %p1712_p6, %p1709_p5 }
 0x18e   :  { %1717 = shalt.err (!%p1714_p7)
}
 0x18f   :  { %s1729_s5 = smov 256   ;;  %s1730_s6 = smov 16  }
 0x190   :  { %1547 = dma.vmem_to_hbm [thread:$0]  %s1542_s2, 1024, %s2011_s3, [#allocation3], %s1729_s5, %s1729_s5, %s1730_s6  }
 0x191   :  { %1718 = dma.done.wait [#allocation3], 1024  }
 0x192   :  { %1719 = vsyncadd [#allocation3], 4294966272 }
 0x193   :  { %1551 = vsyncpa [#allocation3], 1 }

</bundles_post_ra>
